<compile_context>
chip_gen: v5e
topology: v5e:2x2
jax: 0.10.0
libtpu: 0.0.40
codegen_flags: <defaults>
</compile_context>

<pallas_src>
import functools

import jax
import jax.numpy as jnp
from jax.experimental import pallas as pl
from jax.experimental.pallas import tpu as pltpu


def _split_bf16_terms(x):
    """Split f32 `x` into 3 bf16 terms with hi+mid+lo == x (bit-exact for
    normal finite values; Inf/NaN propagate).  Used so the pass-through matmul
    needs only 3 default-precision bf16 MXU passes instead of HIGHEST's 6."""
    hi = x.astype(jnp.bfloat16)
    hi_f = hi.astype(jnp.float32)
    ok = jnp.isfinite(x) & jnp.isfinite(hi_f)        # keep Inf/NaN as Inf/NaN
    r1 = jnp.where(ok, x - hi_f, 0.0)
    mid = r1.astype(jnp.bfloat16)
    lo = (r1 - mid.astype(jnp.float32)).astype(jnp.bfloat16)
    return (hi, mid, lo)


def _upsample_kernel(x_ref, cw_ref, o_ref, *, stride, w_out, wc, n_wchunks, fused):
    """One block of `rb` input rows.

    x_ref : (rb, W)                 each row is one (n, c, h) line of x
    cw_ref: fused   -> (W,  s*W*s)  0/1 matrix doing width AND row replication
            chunked -> (wc, wc*s)   0/1 width-replication matrix for one chunk
    o_ref : (rb, s*W*s)             == (rb*s, W*s) in row-major memory
    """
    x = x_ref[...]
    cw = cw_ref[...]
    terms = _split_bf16_terms(x) if x.dtype == jnp.float32 else (x,)
    s = stride

    for c in range(n_wchunks):
        xs = tuple(t[:, c * wc:(c + 1) * wc] for t in terms)
        y = jnp.dot(xs[0], cw, preferred_element_type=jnp.float32)
        for t in xs[1:]:
            y = y + jnp.dot(t, cw, preferred_element_type=jnp.float32)
        y = y.astype(o_ref.dtype)
        if fused:
            # cw already encodes both replications: single dense block store.
            o_ref[...] = y
        else:
            base = c * wc * s
            for m in range(s):
                o_ref[:, m * w_out + base: m * w_out + base + wc * s] = y


def _pick_w_chunk(width, stride, max_chunk=128):
    """Largest divisor of `width` <= max_chunk; prefer one whose output slice
    (d*stride) is a multiple of 128 lanes (unmasked stores)."""
    best, best_aligned = 1, 0
    for d in range(1, min(width, max_chunk) + 1):
        if width % d == 0:
            best = d
            if (d * stride) % 128 == 0:
                best_aligned = d
    if best_aligned >= 32:
        return best_aligned
    return best if best >= 16 else width   # awkward widths: single full chunk


def _pick_row_block(rows, w_in, out_lanes, itemsize, budget_bytes):
    """Largest sublane-aligned row block under the (in+out) byte budget, with
    at least 2 grid steps so both v7x TensorCores get work."""
    align = 8 if itemsize >= 4 else 16
    if rows <= align:
        return rows
    per_row = (w_in + out_lanes) * itemsize
    rb = max(align, (budget_bytes // max(per_row, 1)) // align * align)
    half = -(-rows // 2)
    half = -(-half // align) * align
    return min(rb, half)


def upsample_nearest(x, stride, *, tile_budget_bytes=4 * 1024 * 1024):
    """Pallas equivalent of Upsample_interpolate.forward (nearest, int stride)."""
    assert x.ndim == 4, "Upsample_interpolate expects NCHW input"
    s = int(stride)
    N, C, H, W = x.shape
    if s == 1:
        return x

    orig_dtype = x.dtype
    if x.dtype != jnp.float32 and x.dtype != jnp.bfloat16:
        # TODO(synk): integer values >= 2**24 lose precision on this f32 path.
        x = x.astype(jnp.float32)

    rows = N * C * H
    w_out = W * s
    out_lanes = s * w_out            # lane width of one output "row" of rows view

    # Small feature maps (typical darknet): fuse row replication into the matrix
    # and emit one dense block store. Large W: chunk the contraction.
    if W * s * s <= 512:
        fused, wc, n_wchunks = True, W, 1
        cw = (jnp.arange(W)[:, None]
              == ((jnp.arange(out_lanes)[None, :] % w_out) // s)).astype(jnp.bfloat16)
    else:
        fused = False
        wc = _pick_w_chunk(W, s)
        n_wchunks = W // wc
        cw = (jnp.arange(wc)[:, None]
              == (jnp.arange(wc * s)[None, :] // s)).astype(jnp.bfloat16)

    itemsize = jnp.dtype(x.dtype).itemsize
    rb = _pick_row_block(rows, W, out_lanes, itemsize, tile_budget_bytes)
    grid = (pl.cdiv(rows, rb),)

    x2d = x.reshape(rows, W)         # free view: row = (n*C + c)*H + h
    kernel = functools.partial(_upsample_kernel, stride=s, w_out=w_out,
                               wc=wc, n_wchunks=n_wchunks, fused=fused)

    out2d = pl.pallas_call(
        kernel,
        out_shape=jax.ShapeDtypeStruct((rows, out_lanes), x.dtype),
        grid_spec=pltpu.PrefetchScalarGridSpec(
            num_scalar_prefetch=0,
            grid=grid,
            in_specs=[
                pl.BlockSpec((rb, W), lambda p: (p, 0)),
                pl.BlockSpec(cw.shape, lambda p: (0, 0)),     # resident constant
            ],
            out_specs=pl.BlockSpec((rb, out_lanes), lambda p: (p, 0)),
        ),
        compiler_params=pltpu.CompilerParams(
            dimension_semantics=("parallel",),
            vmem_limit_bytes=32 * 1024 * 1024,   # safe on v7x (64 MiB physical) too
        ),
    )(x2d, cw)

    # (rows, s*W*s) row-major == (N, C, H*s, W*s) row-major -> free reshape back.
    out = out2d.reshape(N, C, H * s, W * s)
    if out.dtype != orig_dtype:
        out = out.astype(orig_dtype)
    return out


if __name__ == "__main__":
    key = jax.random.PRNGKey(0)
    N, C, H, W = 2, 4, 16, 16
    stride = 2

    # f32 path (3-term bf16 split) -- must be bit-exact.
    x = jax.random.normal(key, (N, C, H, W), dtype=jnp.float32)
    out = jax.block_until_ready(upsample_nearest(x, stride))
    ref = jnp.repeat(jnp.repeat(x, stride, axis=2), stride, axis=3)
    assert out.shape == (N, C, H * stride, W * stride)
    assert out.dtype == x.dtype
    assert jnp.array_equal(out, ref), "f32 mismatch vs nearest-upsample reference"

    # bf16 path (single bf16 MXU pass, no upcast) -- must be bit-exact.
    xb = x.astype(jnp.bfloat16)
    outb = jax.block_until_ready(upsample_nearest(xb, stride))
    refb = jnp.repeat(jnp.repeat(xb, stride, axis=2), stride, axis=3)
    assert outb.dtype == jnp.bfloat16
    assert jnp.array_equal(outb, refb), "bf16 mismatch vs reference"

    # Width-chunked (large-W) path at a tiny size.
    xw = jax.random.normal(jax.random.PRNGKey(1), (1, 2, 8, 256), dtype=jnp.float32)
    outw = jax.block_until_ready(upsample_nearest(xw, 2))
    refw = jnp.repeat(jnp.repeat(xw, 2, axis=2), 2, axis=3)
    assert jnp.array_equal(outw, refw), "chunked-path mismatch vs reference"

    print("KERNEL_OK")
</pallas_src>

<mosaic_0001>
module attributes {stable_mosaic.version = 11 : i64} {
  func.func @_upsample_kernel(%arg0: i32, %arg1: memref<64x16xf32, #tpu.memory_space<vmem>>, %arg2: memref<16x64xbf16, #tpu.memory_space<vmem>>, %arg3: memref<64x64xf32, #tpu.memory_space<vmem>>) attributes {dimension_semantics = [#tpu.dimension_semantics<parallel>], iteration_bounds = array<i64: 2>, scalar_prefetch = 0 : i64, scratch_operands = 0 : i64, tpu.core_type = #tpu.core_type<tc>, window_params = [{transform_indices = @transform_0, window_bounds = array<i64: 64, 16>}, {pipeline_mode = #tpu.pipeline_mode<synchronous>, transform_indices = @transform_1, window_bounds = array<i64: 16, 64>}, {transform_indices = @transform_2, window_bounds = array<i64: 64, 64>}]} {
    %c0 = arith.constant 0 : index
    %c0_0 = arith.constant 0 : index
    %0 = vector.load %arg1[%c0, %c0_0] : memref<64x16xf32, #tpu.memory_space<vmem>>, vector<64x16xf32>
    %c0_1 = arith.constant 0 : index
    %c0_2 = arith.constant 0 : index
    %1 = vector.load %arg2[%c0_1, %c0_2] : memref<16x64xbf16, #tpu.memory_space<vmem>>, vector<16x64xbf16>
    %2 = arith.truncf %0 : vector<64x16xf32> to vector<64x16xbf16>
    %3 = arith.extf %2 : vector<64x16xbf16> to vector<64x16xf32>
    %4 = tpu.weird %0 : vector<64x16xf32> -> vector<64x16xi1>
    %cst = arith.constant dense<true> : vector<64x16xi1>
    %5 = arith.xori %4, %cst : vector<64x16xi1>
    %6 = tpu.weird %3 : vector<64x16xf32> -> vector<64x16xi1>
    %cst_3 = arith.constant dense<true> : vector<64x16xi1>
    %7 = arith.xori %6, %cst_3 : vector<64x16xi1>
    %8 = arith.andi %5, %7 : vector<64x16xi1>
    %9 = arith.subf %0, %3 : vector<64x16xf32>
    %cst_4 = arith.constant 0.000000e+00 : f32
    %10 = vector.broadcast %cst_4 : f32 to vector<64x16xf32>
    %11 = arith.select %8, %9, %10 : vector<64x16xi1>, vector<64x16xf32>
    %12 = arith.truncf %11 : vector<64x16xf32> to vector<64x16xbf16>
    %13 = arith.extf %12 : vector<64x16xbf16> to vector<64x16xf32>
    %14 = arith.subf %11, %13 : vector<64x16xf32>
    %15 = arith.truncf %14 : vector<64x16xf32> to vector<64x16xbf16>
    %cst_5 = arith.constant dense<0.000000e+00> : vector<64x64xf32>
    %16 = tpu.matmul %2, %1, %cst_5 {dimension_numbers = #tpu.dot_dimension_numbers<[1], [0], [0], [1], [0, 0, 1, 1], [], []>} : vector<64x16xbf16>, vector<16x64xbf16>, vector<64x64xf32> -> vector<64x64xf32>
    %cst_6 = arith.constant dense<0.000000e+00> : vector<64x64xf32>
    %17 = tpu.matmul %12, %1, %cst_6 {dimension_numbers = #tpu.dot_dimension_numbers<[1], [0], [0], [1], [0, 0, 1, 1], [], []>} : vector<64x16xbf16>, vector<16x64xbf16>, vector<64x64xf32> -> vector<64x64xf32>
    %18 = arith.addf %16, %17 : vector<64x64xf32>
    %cst_7 = arith.constant dense<0.000000e+00> : vector<64x64xf32>
    %19 = tpu.matmul %15, %1, %cst_7 {dimension_numbers = #tpu.dot_dimension_numbers<[1], [0], [0], [1], [0, 0, 1, 1], [], []>} : vector<64x16xbf16>, vector<16x64xbf16>, vector<64x64xf32> -> vector<64x64xf32>
    %20 = arith.addf %18, %19 : vector<64x64xf32>
    %c0_8 = arith.constant 0 : index
    %c0_9 = arith.constant 0 : index
    %21 = vector.load %arg3[%c0_8, %c0_9] : memref<64x64xf32, #tpu.memory_space<vmem>>, vector<64x64xf32>
    tpu.vector_store %arg3[%c0_8, %c0_9], %20 {strides = array<i32>} : memref<64x64xf32, #tpu.memory_space<vmem>>, vector<64x64xf32>,
    return
  }
  func.func @transform_0(%arg0: i32) -> (i32, i32) {
    %c0_i32 = arith.constant 0 : i32
    %c0_i32_0 = arith.constant 0 : i32
    return %arg0, %c0_i32 : i32, i32
  }
  func.func @transform_1(%arg0: i32) -> (i32, i32) {
    %c0_i32 = arith.constant 0 : i32
    %c0_i32_0 = arith.constant 0 : i32
    %c0_i32_1 = arith.constant 0 : i32
    return %c0_i32, %c0_i32_0 : i32, i32
  }
  func.func @transform_2(%arg0: i32) -> (i32, i32) {
    %c0_i32 = arith.constant 0 : i32
    %c0_i32_0 = arith.constant 0 : i32
    return %arg0, %c0_i32 : i32, i32
  }
}

</mosaic_0001>

<bundles_post_ra>
// kernel: tpu_custom_call.1
= control target key start
LH: loop header
LB: loop body
LE: loop exit
PB: predicated region body
PF: predicated region fallthrough
CT: control target
= control target key end

     0   :  { %s565_s9 = smov 0   ;;  %s760_s0 = inlined_call_operand.vmem [shape: f32[128,16], index: 0, kind: input, shape index: {}]   ;;  %s761_s1 = inlined_call_operand.vmem [shape: bf16[16,64], index: 1, kind: input, shape index: {}]   ;;  %s762_s2 = inlined_call_operand.vmem [shape: f32[128,64], index: 2, kind: output, shape index: {}]  }
   0x1 LB: > { %s501_s10 = sadd.s32 4294967295, %s547_s9   ;;  %p505_p0 = scmp.ge.s32.totalorder %s547_s9, 1  ;;  %s547_s9 = sphi %s565_s9, %s12_s9  }
   0x2   : > { %p113_p1 = scmp.lt.s32.totalorder %s547_s9, 3 }
   0x4   : > { %p114_p2 = pnand %p505_p0, %p113_p1 }
   0x5   : > { %s506_s13 = sshll.u32 (!%p114_p2), %s501_s10, 3 }
   0x6   : > { %117 = sbr.rel (%p114_p2) target bundleno = 212 (0xd4), region = 28  ;;  %p136_p3 = scmp.lt.s32.totalorder (!%p114_p2), %s506_s13, 15 }
   0xb   : > { %v576_v0 = vld [vmem:[%s761_s1] sm:$0xff]  ;;  %s790_s13 = smov (!%p136_p3, %s506_s13), 15  ;;  %vm549_vm2 = vmmov 1   ;;  %vm284_vm7 = vcmask 130048  }
   0xc   : > { %530 = vmatpush.bf16.msra.mxu1 %v576_v0  ;;  %304 = vmatpush.bf16.msra.mxu0 %v576_v0  ;;  %s507_s14 = sshll.u32 %s790_s13, 3 }
   0xd   : > { %529 = vmatpush.bf16.msra.mxu3 %v576_v0  ;;  %531 = vmatpush.bf16.msra.mxu2 %v576_v0  ;;  %s591_s17 = scalar_lea.vmem %s760_s0, %s507_s14  ;;  %s739_s20 = scalar_lea.vmem %s762_s2, %s507_s14 }
   0xe   : > { %v150_v1 = vld [vmem:[%s591_s17 + $0x10] sm:$0xff]  ;;  %v151_v2 = vld [vmem:[%s591_s17 + $0x18] sm:$0xff]  ;;  %v148_v3 = vld [vmem:[%s591_s17] sm:$0xff] }
   0xf   : > { %v160_v4 = vpack.c.bf16 %v150_v1, %v150_v1  ;;  %v161_v5 = vpack.c.bf16 %v151_v2, %v151_v2  ;;  %v149_v6 = vld [vmem:[%s591_s17 + $0x8] sm:$0xff]  ;;  %v597_v7 = vpack.c.bf16 %v148_v3, %v148_v3  ;;  %vm174_vm0 = vweird.f32 %v148_v3  ;;  %v152_v10 = vld [vmem:[%s591_s17 + $0x20] sm:$0xff]  ;;  %v154_v48 = vld [vmem:[%s591_s17 + $0x30] sm:$0xff] }
  0x10   : > { %365 = vmatpush.bf16.msrb.mxu0 %v576_v0  ;;  %v599_v8 = vpack.c.bf16 %v149_v6, %v149_v6  ;;  %vm175_vm1 = vweird.f32 %v149_v6  ;;  %vm602_vm3 = vmxor %vm174_vm0, %vm549_vm2  ;;  %vm176_vm4 = vweird.f32 %v150_v1  ;;  %vm177_vm5 = vweird.f32 %v151_v2  ;;  %v153_v15 = vld [vmem:[%s591_s17 + $0x28] sm:$0xff]  ;;  %v155_v54 = vld [vmem:[%s591_s17 + $0x38] sm:$0xff] }
  0x11   : > { %v168_v11 = vunpack.c.l.bf16 %v160_v4  ;;  %v336_v12 = vunpack.c.l.b16 %v160_v4  ;;  %v337_v13 = vunpack.c.l.b16 %v161_v5  ;;  %vm608_vm6 = vmxor %vm175_vm1, %vm549_vm2  ;;  %v169_v16 = vunpack.c.l.bf16 %v161_v5 }
  0x12   : > { %v166_v17 = vunpack.c.l.bf16 %v597_v7  ;;  %v167_v18 = vunpack.c.l.bf16 %v599_v8  ;;  %vm616_vm8 = vmxor %vm176_vm4, %vm549_vm2  ;;  %v162_v22 = vpack.c.bf16 %v152_v10, %v152_v10  ;;  %v163_v25 = vpack.c.bf16 %v153_v15, %v153_v15 }
  0x13   : > { %v343_v20 = vpack.c.b16 %v337_v13, %v336_v12  ;;  %vm621_vm9 = vmxor %vm177_vm5, %vm549_vm2  ;;  %vm192_vm10 = vweird.f32 %v168_v11  ;;  %vm193_vm0 = vweird.f32 %v169_v16  ;;  %v216_v27 = vsub.f32 %v150_v1, %v168_v11 }
  0x14   : > { %vm190_vm11 = vweird.f32 %v166_v17  ;;  %vm191_vm12 = vweird.f32 %v167_v18  ;;  %v214_v23 = vsub.f32 %v148_v3, %v166_v17  ;;  %vm626_vm13 = vmxor %vm192_vm10, %vm549_vm2  ;;  %v215_v26 = vsub.f32 %v149_v6, %v167_v18 }
  0x15   : > { %519 = vmatmul.msk.bf16.vlgmr.msra.gmra.mxu1 %vm284_vm7, %v343_v20  ;;  %vm198_vm14 = vmxor %vm190_vm11, %vm549_vm2  ;;  %v170_v28 = vunpack.c.l.bf16 %v162_v22  ;;  %v217_v30 = vsub.f32 %v151_v2, %v169_v16  ;;  %v171_v31 = vunpack.c.l.bf16 %v163_v25  ;;  %vm178_vm10 = vweird.f32 %v152_v10 }
  0x16   : > { %vm199_vm15 = vmxor %vm191_vm12, %vm549_vm2  ;;  %v338_v44 = vunpack.c.l.b16 %v162_v22  ;;  %v339_v45 = vunpack.c.l.b16 %v163_v25  ;;  %v164_v58 = vpack.c.bf16 %v154_v48, %v154_v48  ;;  %v165_v62 = vpack.c.bf16 %v155_v54, %v155_v54 }
  0x17   : > { %vm206_vm1 = vmand %vm602_vm3, %vm198_vm14  ;;  %vm657_vm12 = vweird.f32 %v170_v28  ;;  %v218_v47 = vsub.f32 %v152_v10, %v170_v28  ;;  %v219_v53 = vsub.f32 %v153_v15, %v171_v31  ;;  %v334_v9 = vunpack.c.l.b16 %v597_v7 }
  0x18   : > { %vm207_vm4 = vmand %vm608_vm6, %vm199_vm15  ;;  %v637_v29 = vsel %vm206_vm1, %v214_v23, 0.0  ;;  %vm179_vm6 = vweird.f32 %v153_v15  ;;  %v344_v61 = vpack.c.b16 %v339_v45, %v338_v44  ;;  %v172_v3 = vunpack.c.l.bf16 %v164_v58 }
  0x19   : > { %v639_v32 = vsel %vm207_vm4, %v215_v26, 0.0  ;;  %v643_v33 = vpack.c.bf16 %v637_v29, %v637_v29  ;;  %vm201_vm5 = vmxor %vm193_vm0, %vm549_vm2  ;;  %v173_v6 = vunpack.c.l.bf16 %v165_v62  ;;  %vm180_vm4 = vweird.f32 %v154_v48 }
  0x1a   : > { %v648_v34 = vpack.c.bf16 %v639_v32, %v639_v32  ;;  %vm208_vm3 = vmand %vm616_vm8, %vm626_vm13  ;;  %vm667_vm8 = vweird.f32 %v171_v31  ;;  %v340_v18 = vunpack.c.l.b16 %v164_v58  ;;  %v341_v19 = vunpack.c.l.b16 %v165_v62 }
  0x1b   : > { %v266_v35 = vunpack.c.l.b16 %v643_v33  ;;  %vm209_vm11 = vmand %vm621_vm9, %vm201_vm5  ;;  %v224_v36 = vsel %vm208_vm3, %v216_v27, 0.0  ;;  %vm181_vm5 = vweird.f32 %v155_v54  ;;  %v220_v20 = vsub.f32 %v154_v48, %v172_v3 }
  0x1c   : > { %v267_v38 = vunpack.c.l.b16 %v648_v34  ;;  %v225_v39 = vsel %vm209_vm11, %v217_v30, 0.0  ;;  %v232_v40 = vpack.c.bf16 %v224_v36, %v224_v36  ;;  %vm663_vm14 = vmxor %vm178_vm10, %vm549_vm2  ;;  %vm196_vm10 = vweird.f32 %v172_v3 }
  0x1d   : > { %v233_v43 = vpack.c.bf16 %v225_v39, %v225_v39  ;;  %vm672_vm9 = vmxor %vm179_vm6, %vm549_vm2  ;;  %vm197_vm6 = vweird.f32 %v173_v6  ;;  %v221_v21 = vsub.f32 %v155_v54, %v173_v6  ;;  %v345_v24 = vpack.c.b16 %v341_v19, %v340_v18 }
  0x1e   : > { %v274_v49 = vpack.c.b16 %v267_v38, %v266_v35  ;;  %v268_v50 = vunpack.c.l.b16 %v232_v40  ;;  %v240_v51 = vunpack.c.l.bf16 %v232_v40  ;;  %vm680_vm13 = vmxor %vm657_vm12, %vm549_vm2  ;;  %v238_v27 = vunpack.c.l.bf16 %v643_v33 }
  0x1f   : > { %v269_v55 = vunpack.c.l.b16 %v233_v43  ;;  %v241_v56 = vunpack.c.l.bf16 %v233_v43  ;;  %vm203_vm15 = vmxor %vm667_vm8, %vm549_vm2  ;;  %v239_v28 = vunpack.c.l.bf16 %v648_v34 }
  0x20   : > { %514 = vmatmul.msk.bf16.vlgmr.msra.gmra.mxu0 %vm284_vm7, %v274_v49  ;;  %v248_v57 = vsub.f32 %v224_v36, %v240_v51  ;;  %vm210_vm0 = vmand %vm663_vm14, %vm680_vm13  ;;  %v246_v35 = vsub.f32 %v637_v29, %v238_v27 }
  0x21   : > { %v275_v59 = vpack.c.b16 %v269_v55, %v268_v50  ;;  %v249_v60 = vsub.f32 %v225_v39, %v241_v56  ;;  %vm211_vm1 = vmand %vm672_vm9, %vm203_vm15  ;;  %406 = vmatpush.bf16.msra.mxu0 %v576_v0  ;;  %v226_v63 = vsel %vm210_vm0, %v218_v47, 0.0  ;;  %v335_v0 = vunpack.c.l.b16 %v599_v8 }
  0x22   : > { %v227_v1 = vsel %vm211_vm1, %v219_v53, 0.0  ;;  %v234_v4 = vpack.c.bf16 %v226_v63, %v226_v63  ;;  %vm702_vm3 = vmxor %vm180_vm4, %vm549_vm2  ;;  %v247_v36 = vsub.f32 %v639_v32, %v239_v28 }
  0x23   : > { %515 = vmatmul.msk.bf16.vlgmr.msra.gmra.mxu3 %vm284_vm7, %v275_v59  ;;  %v255_v2 = vpack.c.bf16 %v249_v60, %v248_v57  ;;  %v235_v5 = vpack.c.bf16 %v227_v1, %v227_v1  ;;  %vm707_vm11 = vmxor %vm181_vm5, %vm549_vm2  ;;  %v342_v8 = vpack.c.b16 %v335_v0, %v334_v9 }
  0x24   : > { %v242_v10 = vunpack.c.l.bf16 %v234_v4  ;;  %v270_v14 = vunpack.c.l.b16 %v234_v4  ;;  %vm712_vm12 = vmxor %vm196_vm10, %vm549_vm2  ;;  %v254_v41 = vpack.c.bf16 %v247_v36, %v246_v35 }
  0x25   : > { %523 = vmatmul.msk.bf16.vlgmr.msra.gmra.mxu2 %vm284_vm7, %v255_v2  ;;  %520 = vmatmul.msk.bf16.gmra.mxu1 %vm284_vm7, %v344_v61  ;;  %v243_v11 = vunpack.c.l.bf16 %v235_v5  ;;  %v271_v15 = vunpack.c.l.b16 %v235_v5  ;;  %vm205_vm14 = vmxor %vm197_vm6, %vm549_vm2  ;;  %vm436_vm2 = vcmask 523264  }
  0x26   : > { %v250_v16 = vsub.f32 %v226_v63, %v242_v10  ;;  %vm212_vm8 = vmand %vm702_vm3, %vm712_vm12 }
  0x27   : > { %v251_v17 = vsub.f32 %v227_v1, %v243_v11  ;;  %v276_v22 = vpack.c.b16 %v271_v15, %v270_v14  ;;  %vm213_vm9 = vmand %vm707_vm11, %vm205_vm14  ;;  %v228_v25 = vsel %vm212_vm8, %v220_v20, 0.0 }
  0x28   : > { %v229_v26 = vsel %vm213_vm9, %v221_v21, 0.0  ;;  %v236_v30 = vpack.c.bf16 %v228_v25, %v228_v25 }
  0x29   : > { %v256_v23 = vpack.c.bf16 %v251_v17, %v250_v16  ;;  %v237_v31 = vpack.c.bf16 %v229_v26, %v229_v26 }
  0x2a   : > { %v244_v37 = vunpack.c.l.bf16 %v236_v30  ;;  %v272_v39 = vunpack.c.l.b16 %v236_v30 }
  0x2b   : > { %v245_v38 = vunpack.c.l.bf16 %v237_v31  ;;  %v273_v40 = vunpack.c.l.b16 %v237_v31 }
  0x2c   : > { %v252_v42 = vsub.f32 %v228_v25, %v244_v37 }
  0x2d   : > { %v253_v33 = vsub.f32 %v229_v26, %v245_v38  ;;  %v277_v43 = vpack.c.b16 %v273_v40, %v272_v39 }
  0x2f   : > { %v257_v34 = vpack.c.bf16 %v253_v33, %v252_v42 }
  0x30   : > { %518 = vmatmul.msk.bf16.vlgmr.msrb.gmra.mxu0 %vm284_vm7, %v342_v8 }
  0x33   : > { %516 = vmatmul.msk.bf16.gmra.mxu3 %vm284_vm7, %v276_v22 }
  0x35   : > { %524 = vmatmul.msk.bf16.gmra.mxu2 %vm284_vm7, %v256_v23  ;;  %521 = vmatmul.msk.bf16.gmra.mxu1 %vm284_vm7, %v345_v24 }
  0x40   : > { %522 = vmatmul.msk.bf16.vlgmr.msra.gmra.mxu0 %vm284_vm7, %v254_v41 }
  0x43   : > { %517 = vmatmul.msk.bf16.gmra.mxu3 %vm284_vm7, %v277_v43 }
  0x45   : > { %525 = vmatmul.msk.bf16.gmra.mxu2 %vm284_vm7, %v257_v34 }
  0x92   : > { %v372_v44 = vpop.f32.mrf.mxu1 }
  0x9a   : > { %v374_v46 = vpop.f32.mrf.mxu1 }
  0x9d   : > { %v306_v29 = vpop.f32.mrf.mxu0 }
  0xa2   : > { %v377_v53 = vpop.f32.mrf.mxu1 }
  0xa5   : > { %v308_v45 = vpop.f32.mrf.mxu0 }
  0xa6   : > { %v311_v32 = vpop.f32.mrf.mxu3 }
  0xa7   : > { %v373_v47 = vadd.f32 %v372_v44, %v311_v32 }
  0xa8   : > { %v413_v48 = vpop.f32.mrf.mxu2 }
  0xa9   : > { %v430_v49 = vadd.f32 %v413_v48, %v373_v47 }
  0xaa   : > { %v379_v61 = vpop.f32.mrf.mxu1 }
  0xab   : > { %439 = vst.msk [vmem:[%s739_s20 + $0x10] sm:$0xff] %vm436_vm2, %v430_v49 }
  0xad   : > { %v367_v50 = vpop.f32.mrf.mxu0 }
  0xae   : > { %v313_v51 = vpop.f32.mrf.mxu3  ;;  %v368_v62 = vadd.f32 %v367_v50, %v306_v29 }
  0xaf   : > { %v375_v52 = vadd.f32 %v374_v46, %v313_v51 }
  0xb0   : > { %v415_v54 = vpop.f32.mrf.mxu2 }
  0xb1   : > { %v431_v55 = vadd.f32 %v415_v54, %v375_v52 }
  0xb2   : > { %v382_v9 = vpop.f32.mrf.mxu1 }
  0xb3   : > { %440 = vst.msk [vmem:[%s739_s20 + $0x18] sm:$0xff] %vm436_vm2, %v431_v55 }
  0xb5   : > { %v369_v56 = vpop.f32.mrf.mxu0 }
  0xb6   : > { %v316_v57 = vpop.f32.mrf.mxu3  ;;  %v370_v6 = vadd.f32 %v369_v56, %v308_v45 }
  0xb7   : > { %v378_v58 = vadd.f32 %v377_v53, %v316_v57 }
  0xb8   : > { %v418_v59 = vpop.f32.mrf.mxu2 }
  0xb9   : > { %v432_v60 = vadd.f32 %v418_v59, %v378_v58 }
  0xba   : > { %v384_v15 = vpop.f32.mrf.mxu1 }
  0xbb   : > { %441 = vst.msk [vmem:[%s739_s20 + $0x20] sm:$0xff] %vm436_vm2, %v432_v60 }
  0xbd   : > { %v408_v63 = vpop.f32.mrf.mxu0 }
  0xbe   : > { %v318_v1 = vpop.f32.mrf.mxu3  ;;  %v428_v2 = vadd.f32 %v408_v63, %v368_v62 }
  0xbf   : > { %v380_v3 = vadd.f32 %v379_v61, %v318_v1 }
  0xc0   : > { %437 = vst.msk [vmem:[%s739_s20] sm:$0xff] %vm436_vm2, %v428_v2  ;;  %v420_v4 = vpop.f32.mrf.mxu2 }
  0xc1   : > { %v433_v5 = vadd.f32 %v420_v4, %v380_v3 }
  0xc3   : > { %442 = vst.msk [vmem:[%s739_s20 + $0x28] sm:$0xff] %vm436_vm2, %v433_v5 }
  0xc5   : > { %v410_v0 = vpop.f32.mrf.mxu0 }
  0xc6   : > { %v321_v10 = vpop.f32.mrf.mxu3  ;;  %v429_v11 = vadd.f32 %v410_v0, %v370_v6 }
  0xc7   : > { %v383_v12 = vadd.f32 %v382_v9, %v321_v10 }
  0xc8   : > { %438 = vst.msk [vmem:[%s739_s20 + $0x8] sm:$0xff] %vm436_vm2, %v429_v11  ;;  %v423_v13 = vpop.f32.mrf.mxu2 }
  0xc9   : > { %v434_v14 = vadd.f32 %v423_v13, %v383_v12 }
  0xcb   : > { %443 = vst.msk [vmem:[%s739_s20 + $0x30] sm:$0xff] %vm436_vm2, %v434_v14 }
  0xce   : > { %v323_v7 = vpop.f32.mrf.mxu3 }
  0xcf   : > { %v385_v8 = vadd.f32 %v384_v15, %v323_v7 }
  0xd0   : > { %v425_v16 = vpop.f32.mrf.mxu2 }
  0xd1   : > { %v435_v17 = vadd.f32 %v425_v16, %v385_v8 }
  0xd3   : > { %444 = vst.msk [vmem:[%s739_s20 + $0x38] sm:$0xff] %vm436_vm2, %v435_v17 }
  0xd4 PF: > { %s12_s9 = sadd.s32 1, %s547_s9  }
  0xd5   : > { %p9_p4 = scmp.ge.s32.totalorder %s12_s9, 4  }
  0xd7   :  { %11 = sbr.rel (!%p9_p4) target bundleno = 1 (0x1), region = 58 }

</bundles_post_ra>
